<compile_context>
chip_gen: v7x
topology: tpu7x:2x2x1
jax: 0.10.0
libtpu: 0.0.40
codegen_flags: <defaults>
</compile_context>

<pallas_src>
import functools

import jax
import jax.numpy as jnp
from jax.experimental import pallas as pl
from jax.experimental.pallas import tpu as pltpu


def av_fusion_kernel(a_ref, v_ref, wa_ref, wv_ref, b_ref,
                     a_out_ref, v_out_ref, out_ref,
                     aacc_ref, vacc_ref,
                     *, inv_vrows, inv_arows):
    # a_ref : (bt, Sa, C)   audio features for this batch tile (resident over ti)
    # v_ref : (bt, rc, C)   one chunk of (zero-padded) visual rows (bf16)
    # wa/wv : (C, Npad)     bf16 halves of the concat-classifier weight
    # b_ref : (1, Npad)     f32 bias
    # aacc/vacc : (bt, 1, C) f32 scratch accumulators
    ti = pl.program_id(1)

    @pl.when(ti == 0)
    def _():
        vacc_ref[...] = jnp.zeros_like(vacc_ref)
        # Audio pool once, off the tail step: column sums on the MXU
        # (ones(1,Sa) @ rows), bf16 inputs, f32 accumulation.
        a = a_ref[...]
        ones_a = jnp.ones((a.shape[0], 1, a.shape[1]), dtype=a.dtype)
        a_sum = jnp.einsum('bor,brc->boc', ones_a, a,
                           preferred_element_type=jnp.float32)
        aacc_ref[...] = a_sum * inv_arows

    # Steady state: this visual chunk's row-sum on the MXU (VALU slot stays
    # free); any zero-padded rows contribute exactly 0.
    v = v_ref[...]
    ones_v = jnp.ones((v.shape[0], 1, v.shape[1]), dtype=v.dtype)
    vacc_ref[...] += jnp.einsum('bor,brc->boc', ones_v, v,
                                preferred_element_type=jnp.float32)

    @pl.when(ti == pl.num_programs(1) - 1)
    def _():
        a_pool = aacc_ref[...][:, 0, :]                  # (bt, C) f32, already mean
        v_pool = vacc_ref[...][:, 0, :] * inv_vrows      # (bt, C) f32
        a_out_ref[...] = a_pool.astype(a_out_ref.dtype)
        v_out_ref[...] = v_pool.astype(v_out_ref.dtype)
        # concat([a, v]) @ W == a @ W[:C] + v @ W[C:]  (bf16 MXU, f32 accumulate)
        logits = jnp.dot(a_pool.astype(wa_ref.dtype), wa_ref[...],
                         preferred_element_type=jnp.float32)
        logits = logits + jnp.dot(v_pool.astype(wv_ref.dtype), wv_ref[...],
                                  preferred_element_type=jnp.float32)
        out_ref[...] = (logits + b_ref[...]).astype(out_ref.dtype)


def _pick_batch_tile(B):
    # For small B use the whole batch per grid step: splitting a few-us
    # workload across programs only adds ~0.35 us/step overhead and makes the
    # (bt, C) pooled-output stores sublane-sparse (single-TC v5e/v6e gain
    # nothing from >=2 programs; tiny-B v7x loses more than it gains).  For
    # large B cap at 8 (sublane-dense stores) which still leaves >=2 programs
    # on the parallel axis for v7x's two TensorCores.
    if B <= 8:
        return B
    for bt in (8, 4, 2):
        if B % bt == 0:
            return bt
    return 1


def _pick_row_chunk(v_rows, target):
    """Pick the T*H*W chunk size; returns (chunk_rows, padded_total_rows).

    Prefers an exact divisor (multiple of 8) near `target` so no padding copy
    is needed; otherwise the row axis is zero-padded to a multiple of the
    target chunk, guaranteeing the reduction stays chunked (never a single
    giant block that disables DMA/compute overlap or blows VMEM on v7x).
    """
    target = max(8, (target // 8) * 8)
    if v_rows <= target:
        return v_rows, v_rows
    if v_rows % 8 == 0:
        rc = target
        while rc >= max(8, target // 2):
            if v_rows % rc == 0:
                return rc, v_rows
            rc -= 8
    rc = target
    padded = ((v_rows + rc - 1) // rc) * rc
    return rc, padded


def prepare_concat_classifier(w, bias, C):
    """Pad / split / cast the ConcatFusion nn.Linear params ONCE (outside the
    per-call path).  `w` must be in x @ W layout, i.e. shape (2C, n_classes):
    pass PyTorch's nn.Linear weight TRANSPOSED, or the logits will be wrong."""
    assert w.shape[0] == 2 * C
    n_classes = w.shape[1]
    n_pad = ((n_classes + 127) // 128) * 128
    wa = jnp.pad(w[:C], ((0, 0), (0, n_pad - n_classes))).astype(jnp.bfloat16)
    wv = jnp.pad(w[C:], ((0, 0), (0, n_pad - n_classes))).astype(jnp.bfloat16)
    b = jnp.pad(bias.astype(jnp.float32), (0, n_pad - n_classes)).reshape(1, n_pad)
    return wa, wv, b, n_classes


def av_classifier_forward(a_feats, v_feats, wa, wv, b, B, n_classes, *,
                          row_chunk_target=512):
    """Post-backbone forward of AVClassifier_34 with ConcatFusion.

    a_feats: (B,   Ha, Wa, C)  audio backbone output (NHWC)
    v_feats: (B*T, H,  W,  C)  visual backbone output (NHWC)
    wa/wv/b: from prepare_concat_classifier (bf16 lane-padded weight halves)
    returns  (a_pooled, v_pooled, logits) like the PyTorch module.
    """
    Ba, Ha, Wa_, C = a_feats.shape
    BT, H, W_, Cv = v_feats.shape
    assert Ba == B and Cv == C and BT % B == 0
    T = BT // B
    v_rows = T * H * W_
    a_rows = Ha * Wa_
    n_pad = wa.shape[1]

    # Pure views (channels already last) -- no HBM layout pass.
    v_x = v_feats.reshape(B, v_rows, C)
    a_x = a_feats.reshape(B, a_rows, C)

    bt = _pick_batch_tile(B)
    rc, v_rows_pad = _pick_row_chunk(v_rows, row_chunk_target)
    if v_rows_pad != v_rows:
        # Zero rows contribute 0 to the chunked sum; the divisor below stays
        # the true T*H*W, so the mean is exact.
        v_x = jnp.pad(v_x, ((0, 0), (0, v_rows_pad - v_rows), (0, 0)))
    grid = (B // bt, v_rows_pad // rc)

    # Explicit VMEM budget (v7x: 64 MiB physical / 32 MiB default scoped).
    vmem_need = (
        2 * bt * rc * C * v_x.dtype.itemsize          # visual chunk x2 buffers
        + 2 * bt * a_rows * C * a_x.dtype.itemsize    # resident audio block x2
        + 2 * 2 * C * n_pad * wa.dtype.itemsize       # wa + wv x2
        + 2 * n_pad * 4                               # bias x2
        + 2 * (2 * bt * C + bt * n_pad) * 4           # outputs x2
        + 2 * bt * 8 * C * 4                          # f32 accumulators (sublane pad)
    )
    vmem_limit = int(min(max(2 * vmem_need, 32 << 20), 64 << 20))

    kernel = functools.partial(av_fusion_kernel,
                               inv_vrows=1.0 / v_rows, inv_arows=1.0 / a_rows)

    a_out, v_out, out = pl.pallas_call(
        kernel,
        out_shape=(jax.ShapeDtypeStruct((B, C), jnp.float32),
                   jax.ShapeDtypeStruct((B, C), jnp.float32),
                   jax.ShapeDtypeStruct((B, n_pad), jnp.float32)),
        grid=grid,
        in_specs=[
            # audio: constant block index across ti -> fetched once per batch tile
            pl.BlockSpec((bt, a_rows, C), lambda bi, ti: (bi, 0, 0)),
            # visual: chunked over the (padded) T*H*W reduction axis
            pl.BlockSpec((bt, rc, C), lambda bi, ti: (bi, ti, 0)),
            pl.BlockSpec((C, n_pad), lambda bi, ti: (0, 0)),
            pl.BlockSpec((C, n_pad), lambda bi, ti: (0, 0)),
            pl.BlockSpec((1, n_pad), lambda bi, ti: (0, 0)),
            # TODO(synk): the constant-index inputs (audio, wa, wv, b) could use
            # pipeline_mode=pl.Buffered(1) to reclaim their second VMEM buffer
            # on the 64 MiB v7x part; kept at the default to stay conservative.
        ],
        out_specs=(
            pl.BlockSpec((bt, C), lambda bi, ti: (bi, 0)),
            pl.BlockSpec((bt, C), lambda bi, ti: (bi, 0)),
            pl.BlockSpec((bt, n_pad), lambda bi, ti: (bi, 0)),
        ),
        scratch_shapes=[pltpu.VMEM((bt, 1, C), jnp.float32),   # audio pooled
                        pltpu.VMEM((bt, 1, C), jnp.float32)],  # visual accumulator
        compiler_params=pltpu.CompilerParams(
            dimension_semantics=("parallel", "arbitrary"),
            vmem_limit_bytes=vmem_limit),
    )(a_x, v_x, wa, wv, b)
    return a_out, v_out, out[:, :n_classes]


if __name__ == "__main__":
    key = jax.random.PRNGKey(0)
    # Small shapes consistent with the module: B samples, T visual frames,
    # C backbone channels (lane-dense 128), small ODD spatial maps (resnet
    # 7x7-like) so the zero-pad / multi-chunk reduction path is exercised,
    # AVMNIST class count.
    B, T, C = 2, 5, 128
    H = W = 3                 # visual feature map -> v_rows = 45 (not /8)
    Ha, Wa = 3, 5             # audio (spectrogram) feature map -> a_rows = 15
    n_classes = 10            # args.dataset = 'AVMNIST'

    k1, k2, k3, k4 = jax.random.split(key, 4)
    # Synthetic backbone outputs: NHWC, bf16 (halves the dominant HBM read).
    a_feats = jax.random.normal(k1, (B, Ha, Wa, C), dtype=jnp.float32).astype(jnp.bfloat16)
    v_feats = jax.random.normal(k2, (B * T, H, W, C), dtype=jnp.float32).astype(jnp.bfloat16)
    # ConcatFusion nn.Linear(2C, n_classes) parameters in x @ W layout
    # (PyTorch stores (out_features, in_features); pass weight.T here).
    w = jax.random.normal(k3, (2 * C, n_classes), dtype=jnp.float32) * 0.05
    bias = jax.random.normal(k4, (n_classes,), dtype=jnp.float32) * 0.01

    wa, wv, bp, nc = prepare_concat_classifier(w, bias, C)
    # row_chunk_target=16 keeps several reduction chunks at these tiny demo
    # shapes so the accumulate + zero-pad path is actually tested
    # (production default is 512).
    a_out, v_out, out = av_classifier_forward(a_feats, v_feats, wa, wv, bp,
                                              B, nc, row_chunk_target=16)
    jax.block_until_ready((a_out, v_out, out))

    # Pure-JAX reference of the PyTorch forward semantics (post-backbone).
    a_f = a_feats.astype(jnp.float32)
    v_f = v_feats.astype(jnp.float32)
    a_ref = a_f.mean(axis=(1, 2))                               # adaptive_avg_pool2d(1)
    v_ref = v_f.reshape(B, T, H, W, C).mean(axis=(1, 2, 3))     # adaptive_avg_pool3d(1)
    out_ref = jnp.concatenate([a_ref, v_ref], axis=1) @ w + bias

    assert a_out.shape == (B, C) and v_out.shape == (B, C) and out.shape == (B, n_classes)
    assert jnp.allclose(a_out, a_ref, atol=1e-3, rtol=1e-3)
    assert jnp.allclose(v_out, v_ref, atol=1e-3, rtol=1e-3)
    # Logits go through bf16 weights / bf16 pooled features on the MXU.
    assert jnp.allclose(out, out_ref, atol=1e-2, rtol=1e-2)
    print("KERNEL_OK")
</pallas_src>

<mosaic_0001>
module attributes {stable_mosaic.version = 11 : i64} {
  func.func @av_fusion_kernel(%arg0: i32, %arg1: i32, %arg2: memref<2x15x128xbf16, #tpu.memory_space<vmem>>, %arg3: memref<2x16x128xbf16, #tpu.memory_space<vmem>>, %arg4: memref<128x128xbf16, #tpu.memory_space<vmem>>, %arg5: memref<128x128xbf16, #tpu.memory_space<vmem>>, %arg6: memref<1x128xf32, #tpu.memory_space<vmem>>, %arg7: memref<2x128xf32, #tpu.memory_space<vmem>>, %arg8: memref<2x128xf32, #tpu.memory_space<vmem>>, %arg9: memref<2x128xf32, #tpu.memory_space<vmem>>, %arg10: memref<2x1x128xf32, #tpu.memory_space<vmem>>, %arg11: memref<2x1x128xf32, #tpu.memory_space<vmem>>) attributes {dimension_semantics = [#tpu.dimension_semantics<parallel>, #tpu.dimension_semantics<arbitrary>], iteration_bounds = array<i64: 1, 3>, scalar_prefetch = 0 : i64, scratch_operands = 2 : i64, tpu.core_type = #tpu.core_type<tc>, window_params = [{transform_indices = @transform_0, window_bounds = array<i64: 2, 15, 128>}, {transform_indices = @transform_1, window_bounds = array<i64: 2, 16, 128>}, {pipeline_mode = #tpu.pipeline_mode<synchronous>, transform_indices = @transform_2, window_bounds = array<i64: 128, 128>}, {pipeline_mode = #tpu.pipeline_mode<synchronous>, transform_indices = @transform_3, window_bounds = array<i64: 128, 128>}, {pipeline_mode = #tpu.pipeline_mode<synchronous>, transform_indices = @transform_4, window_bounds = array<i64: 1, 128>}, {transform_indices = @transform_5, window_bounds = array<i64: 2, 128>}, {transform_indices = @transform_6, window_bounds = array<i64: 2, 128>}, {transform_indices = @transform_7, window_bounds = array<i64: 2, 128>}]} {
    %c0_i32 = arith.constant 0 : i32
    %0 = arith.cmpi eq, %arg1, %c0_i32 : i32
    %1 = arith.extui %0 : i1 to i32
    %c0_i32_0 = arith.constant 0 : i32
    %2 = arith.cmpi ne, %1, %c0_i32_0 : i32
    scf.if %2 {
      %cst_11 = arith.constant 0.000000e+00 : f32
      %12 = vector.broadcast %cst_11 : f32 to vector<2x1x128xf32>
      %c0_12 = arith.constant 0 : index
      %c0_13 = arith.constant 0 : index
      %c0_14 = arith.constant 0 : index
      %13 = vector.load %arg11[%c0_12, %c0_13, %c0_14] : memref<2x1x128xf32, #tpu.memory_space<vmem>>, vector<2x1x128xf32>
      tpu.vector_store %arg11[%c0_12, %c0_13, %c0_14], %12 {strides = array<i32>} : memref<2x1x128xf32, #tpu.memory_space<vmem>>, vector<2x1x128xf32>,
      %c0_15 = arith.constant 0 : index
      %c0_16 = arith.constant 0 : index
      %c0_17 = arith.constant 0 : index
      %14 = vector.load %arg2[%c0_15, %c0_16, %c0_17] : memref<2x15x128xbf16, #tpu.memory_space<vmem>>, vector<2x15x128xbf16>
      %cst_18 = arith.constant 1.000000e+00 : bf16
      %15 = vector.broadcast %cst_18 : bf16 to vector<2x1x15xbf16>
      "tpu.trace_start"() <{level = 10 : i32, message = "bor,brc->boc"}> : () -> ()
      %cst_19 = arith.constant dense<0.000000e+00> : vector<2x1x128xf32>
      %16 = tpu.matmul %15, %14, %cst_19 {dimension_numbers = #tpu.dot_dimension_numbers<[2], [1], [1], [2], [0, 0, 0, 1, 1, 2], [0], [0]>} : vector<2x1x15xbf16>, vector<2x15x128xbf16>, vector<2x1x128xf32> -> vector<2x1x128xf32>
      "tpu.trace_stop"() : () -> ()
      %cst_20 = arith.constant 0.0666666701 : f32
      %17 = vector.broadcast %cst_20 : f32 to vector<2x1x128xf32>
      %18 = arith.mulf %16, %17 : vector<2x1x128xf32>
      %c0_21 = arith.constant 0 : index
      %c0_22 = arith.constant 0 : index
      %c0_23 = arith.constant 0 : index
      %19 = vector.load %arg10[%c0_21, %c0_22, %c0_23] : memref<2x1x128xf32, #tpu.memory_space<vmem>>, vector<2x1x128xf32>
      tpu.vector_store %arg10[%c0_21, %c0_22, %c0_23], %18 {strides = array<i32>} : memref<2x1x128xf32, #tpu.memory_space<vmem>>, vector<2x1x128xf32>,
    } else {
    }
    %c0 = arith.constant 0 : index
    %c0_1 = arith.constant 0 : index
    %c0_2 = arith.constant 0 : index
    %3 = vector.load %arg3[%c0, %c0_1, %c0_2] : memref<2x16x128xbf16, #tpu.memory_space<vmem>>, vector<2x16x128xbf16>
    %cst = arith.constant 1.000000e+00 : bf16
    %4 = vector.broadcast %cst : bf16 to vector<2x1x16xbf16>
    %c0_3 = arith.constant 0 : index
    %c0_4 = arith.constant 0 : index
    %c0_5 = arith.constant 0 : index
    %5 = vector.load %arg11[%c0_3, %c0_4, %c0_5] : memref<2x1x128xf32, #tpu.memory_space<vmem>>, vector<2x1x128xf32>
    "tpu.trace_start"() <{level = 10 : i32, message = "bor,brc->boc"}> : () -> ()
    %cst_6 = arith.constant dense<0.000000e+00> : vector<2x1x128xf32>
    %6 = tpu.matmul %4, %3, %cst_6 {dimension_numbers = #tpu.dot_dimension_numbers<[2], [1], [1], [2], [0, 0, 0, 1, 1, 2], [0], [0]>} : vector<2x1x16xbf16>, vector<2x16x128xbf16>, vector<2x1x128xf32> -> vector<2x1x128xf32>
    "tpu.trace_stop"() : () -> ()
    %7 = arith.addf %5, %6 : vector<2x1x128xf32>
    %c0_7 = arith.constant 0 : index
    %c0_8 = arith.constant 0 : index
    %c0_9 = arith.constant 0 : index
    %8 = vector.load %arg11[%c0_7, %c0_8, %c0_9] : memref<2x1x128xf32, #tpu.memory_space<vmem>>, vector<2x1x128xf32>
    tpu.vector_store %arg11[%c0_7, %c0_8, %c0_9], %7 {strides = array<i32>} : memref<2x1x128xf32, #tpu.memory_space<vmem>>, vector<2x1x128xf32>,
    %c2_i32 = arith.constant 2 : i32
    %9 = arith.cmpi eq, %arg1, %c2_i32 : i32
    %10 = arith.extui %9 : i1 to i32
    %c0_i32_10 = arith.constant 0 : i32
    %11 = arith.cmpi ne, %10, %c0_i32_10 : i32
    scf.if %11 {
      %c0_11 = arith.constant 0 : index
      %c0_12 = arith.constant 0 : index
      %c0_13 = arith.constant 0 : index
      %12 = vector.load %arg10[%c0_11, %c0_12, %c0_13] : memref<2x1x128xf32, #tpu.memory_space<vmem>>, vector<2x1x128xf32>
      %13 = vector.shape_cast %12 : vector<2x1x128xf32> to vector<2x128xf32>
      %c0_14 = arith.constant 0 : index
      %c0_15 = arith.constant 0 : index
      %c0_16 = arith.constant 0 : index
      %14 = vector.load %arg11[%c0_14, %c0_15, %c0_16] : memref<2x1x128xf32, #tpu.memory_space<vmem>>, vector<2x1x128xf32>
      %15 = vector.shape_cast %14 : vector<2x1x128xf32> to vector<2x128xf32>
      %cst_17 = arith.constant 0.0222222228 : f32
      %16 = vector.broadcast %cst_17 : f32 to vector<2x128xf32>
      %17 = arith.mulf %15, %16 : vector<2x128xf32>
      %c0_18 = arith.constant 0 : index
      %c0_19 = arith.constant 0 : index
      %18 = vector.load %arg7[%c0_18, %c0_19] : memref<2x128xf32, #tpu.memory_space<vmem>>, vector<2x128xf32>
      tpu.vector_store %arg7[%c0_18, %c0_19], %13 {strides = array<i32>} : memref<2x128xf32, #tpu.memory_space<vmem>>, vector<2x128xf32>,
      %c0_20 = arith.constant 0 : index
      %c0_21 = arith.constant 0 : index
      %19 = vector.load %arg8[%c0_20, %c0_21] : memref<2x128xf32, #tpu.memory_space<vmem>>, vector<2x128xf32>
      tpu.vector_store %arg8[%c0_20, %c0_21], %17 {strides = array<i32>} : memref<2x128xf32, #tpu.memory_space<vmem>>, vector<2x128xf32>,
      %20 = arith.truncf %13 : vector<2x128xf32> to vector<2x128xbf16>
      %c0_22 = arith.constant 0 : index
      %c0_23 = arith.constant 0 : index
      %21 = vector.load %arg4[%c0_22, %c0_23] : memref<128x128xbf16, #tpu.memory_space<vmem>>, vector<128x128xbf16>
      %cst_24 = arith.constant dense<0.000000e+00> : vector<2x128xf32>
      %22 = tpu.matmul %20, %21, %cst_24 {dimension_numbers = #tpu.dot_dimension_numbers<[1], [0], [0], [1], [0, 0, 1, 1], [], []>} : vector<2x128xbf16>, vector<128x128xbf16>, vector<2x128xf32> -> vector<2x128xf32>
      %23 = arith.truncf %17 : vector<2x128xf32> to vector<2x128xbf16>
      %c0_25 = arith.constant 0 : index
      %c0_26 = arith.constant 0 : index
      %24 = vector.load %arg5[%c0_25, %c0_26] : memref<128x128xbf16, #tpu.memory_space<vmem>>, vector<128x128xbf16>
      %cst_27 = arith.constant dense<0.000000e+00> : vector<2x128xf32>
      %25 = tpu.matmul %23, %24, %cst_27 {dimension_numbers = #tpu.dot_dimension_numbers<[1], [0], [0], [1], [0, 0, 1, 1], [], []>} : vector<2x128xbf16>, vector<128x128xbf16>, vector<2x128xf32> -> vector<2x128xf32>
      %26 = arith.addf %22, %25 : vector<2x128xf32>
      %c0_28 = arith.constant 0 : index
      %c0_29 = arith.constant 0 : index
      %27 = vector.load %arg6[%c0_28, %c0_29] : memref<1x128xf32, #tpu.memory_space<vmem>>, vector<1x128xf32>
      %28 = vector.broadcast %27 : vector<1x128xf32> to vector<2x128xf32>
      %29 = arith.addf %26, %28 : vector<2x128xf32>
      %c0_30 = arith.constant 0 : index
      %c0_31 = arith.constant 0 : index
      %30 = vector.load %arg9[%c0_30, %c0_31] : memref<2x128xf32, #tpu.memory_space<vmem>>, vector<2x128xf32>
      tpu.vector_store %arg9[%c0_30, %c0_31], %29 {strides = array<i32>} : memref<2x128xf32, #tpu.memory_space<vmem>>, vector<2x128xf32>,
    } else {
    }
    return
  }
  func.func @transform_0(%arg0: i32, %arg1: i32) -> (i32, i32, i32) {
    %c0_i32 = arith.constant 0 : i32
    %c0_i32_0 = arith.constant 0 : i32
    %c0_i32_1 = arith.constant 0 : i32
    return %arg0, %c0_i32, %c0_i32_0 : i32, i32, i32
  }
  func.func @transform_1(%arg0: i32, %arg1: i32) -> (i32, i32, i32) {
    %c0_i32 = arith.constant 0 : i32
    %c0_i32_0 = arith.constant 0 : i32
    return %arg0, %arg1, %c0_i32 : i32, i32, i32
  }
  func.func @transform_2(%arg0: i32, %arg1: i32) -> (i32, i32) {
    %c0_i32 = arith.constant 0 : i32
    %c0_i32_0 = arith.constant 0 : i32
    %c0_i32_1 = arith.constant 0 : i32
    return %c0_i32, %c0_i32_0 : i32, i32
  }
  func.func @transform_3(%arg0: i32, %arg1: i32) -> (i32, i32) {
    %c0_i32 = arith.constant 0 : i32
    %c0_i32_0 = arith.constant 0 : i32
    %c0_i32_1 = arith.constant 0 : i32
    return %c0_i32, %c0_i32_0 : i32, i32
  }
  func.func @transform_4(%arg0: i32, %arg1: i32) -> (i32, i32) {
    %c0_i32 = arith.constant 0 : i32
    %c0_i32_0 = arith.constant 0 : i32
    %c0_i32_1 = arith.constant 0 : i32
    return %c0_i32, %c0_i32_0 : i32, i32
  }
  func.func @transform_5(%arg0: i32, %arg1: i32) -> (i32, i32) {
    %c0_i32 = arith.constant 0 : i32
    %c0_i32_0 = arith.constant 0 : i32
    return %arg0, %c0_i32 : i32, i32
  }
  func.func @transform_6(%arg0: i32, %arg1: i32) -> (i32, i32) {
    %c0_i32 = arith.constant 0 : i32
    %c0_i32_0 = arith.constant 0 : i32
    return %arg0, %c0_i32 : i32, i32
  }
  func.func @transform_7(%arg0: i32, %arg1: i32) -> (i32, i32) {
    %c0_i32 = arith.constant 0 : i32
    %c0_i32_0 = arith.constant 0 : i32
    return %arg0, %c0_i32 : i32, i32
  }
}

</mosaic_0001>

<bundles_post_ra>
// kernel: tpu_custom_call.1
= control target key start
LH: loop header
LB: loop body
LE: loop exit
PB: predicated region body
PF: predicated region fallthrough
CT: control target
= control target key end

     0   :  { %13 = vsyncpa [#allocation5], 0  ;;  %s1883_s0 = inlined_call_operand.vmem [shape: bf16[2,15,128], index: 0, kind: input, shape index: {}]   ;;  %s1884_s1 = inlined_call_operand.hbm [shape: bf16[2,48,128], index: 1, kind: input, shape index: {}]   ;;  %s1885_s2 = inlined_call_operand.hbm [shape: bf16[128,128], index: 2, kind: input, shape index: {}]   ;;  %s1886_s3 = inlined_call_operand.hbm [shape: bf16[128,128], index: 3, kind: input, shape index: {}]   ;;  %s1887_s4 = inlined_call_operand.vmem [shape: f32[1,128], index: 4, kind: input, shape index: {}]   ;;  %s1888_s5 = inlined_call_operand.hbm [shape: f32[2,128], index: 5, kind: output, shape index: {0}]   ;;  %s1889_s6 = inlined_call_operand.hbm [shape: f32[2,128], index: 6, kind: output, shape index: {1}]   ;;  %s1890_s7 = inlined_call_operand.hbm [shape: f32[2,128], index: 7, kind: output, shape index: {2}]  }
   0x1   :  { %15 = vsyncpa [#allocation5 + $0x1], 0 }
   0x2   :  { %16 = vsyncpa [#allocation8], 0 }
   0x3   :  { %17 = vsyncpa [#allocation6], 0 }
   0x4   :  { %18 = vsyncpa [#allocation12], 0  ;;  %s1605_s24 = smov 0   ;;  %s1607_s25 = smov 0  }
   0x5   :  { %s1609_s26 = smov 0   ;;  %s1611_s27 = smov 0  }
   0x6   :  { %s1613_s28 = smov 0   ;;  %s1615_s29 = smov 0  }
   0x7 LB: > { %s1896_s30 = sadd.s32 4294967295, %s1540_s29   ;;  %s33_s8 = sadd.s32 1, %s1536_s28  ;;  %s1540_s29 = sphi %s1615_s29, %s24_s29   ;;  %s1536_s28 = sphi %s1613_s28, %s1917_s28   ;;  %s1532_s27 = sphi %s1611_s27, %s1916_s27   ;;  %s1528_s26 = sphi %s1609_s26, %s1915_s26   ;;  %s1524_s25 = sphi %s1607_s25, %s1914_s25   ;;  %s1520_s24 = sphi %s1605_s24, %s1913_s24  }
   0x8   : > { %p34_p0 = scmp.ge.s32.totalorder %s33_s8, 3  ;;  %s71_s9 = sadd.s32 1, %s1528_s26 }
   0x9   : > { %p78_p1 = scmp.ne.s32.totalorder %s1528_s26, %s1524_s25  ;;  %p79_p2 = scmp.eq.s32.totalorder %s1540_s29, 0 }
   0xa   : > { %s1919_s8 = smov (%p34_p0, %s33_s8), 0  ;;  %p84_p4 = scmp.ne.s32.totalorder %s1524_s25, %s1520_s24 }
   0xb   : > { %1898 = sst [smem:[#allocation21_spill]] %s1919_s8  ;;  %p1641_p3 = por %p79_p2, %p78_p1 }
   0xc   : > { %s67_s11 = ssub.s32 %s1536_s28, %s1919_s8  ;;  %p1650_p5 = scmp.eq.s32.totalorder %s1896_s30, 0 }
   0xd   : > { %s1899_s10 = scalar_select %p1641_p3, 1, 0 }
   0xe   : > { %s1900_s12 = scalar_select %p1650_p5, 1, 0 }
   0xf   : > { %p69_p6 = scmp.eq.s32.totalorder %s67_s11, 0  ;;  %p1065_p7 = scmp.ge.s32.totalorder %s1540_s29, 1 }
  0x10   : > { %p1657_p8 = por %p1650_p5, %p84_p4  ;;  %p236_p9 = scmp.lt.s32.totalorder %s1540_s29, 4 }
  0x11   : > { %s1663_s14 = scalar_select %p69_p6, %s1528_s26, %s71_s9  }
  0x12   : > { %s1901_s13 = scalar_select %p1657_p8, 1, 0 }
  0x13   : > { %1902 = sst [smem:[#allocation22_spill]] %s1663_s14  ;;  %p1665_p10 = pnand %p1065_p7, %p236_p9 }
  0x14   : > { %s1542_s16 = smov [#allocation7]   ;;  %s1543_s19 = smov [#allocation9]  }
  0x15   : > { %s1903_s15 = scalar_select %p1665_p10, 1, 0 }
  0x16   : > { %p1236_p11 = pneg %p1665_p10  ;;  %s258_s17 = sshll.u32 %s1542_s16, 4  ;;  %s259_s17 = int_to_ptr.vmem [resolvable:$true] %s258_s17 }
  0x17   : > { %s271_s20 = sshll.u32 %s1543_s19, 4  ;;  %s1344_s23 = scalar_lea.hbm %s1885_s2, 1024  ;;  %s1677_s20 = int_to_ptr.vmem [resolvable:$true] %s271_s20 }
  0x18   : > { %p1673_p12 = pnand %p1236_p11, %p1650_p5  ;;  %p1345_p13 = scmp.ne.s32.totalorder %s1885_s2, %s1344_s23 }
  0x19   : > { %p1351_p4 = scmp.lt.u32.totalorder %s1344_s23, %s1885_s2 }
  0x1a   : > { %p1346_p0 = pneg %p1673_p12 }
  0x1c   : > { %p1347_p1 = pnand %p1346_p0, %p1345_p13 }
  0x1e   : > { %p1348_p2 = pneg %p1347_p1 }
  0x20   : > { %p1353_p6 = pnand %p1351_p4, %p1348_p2 }
  0x22   : > { %1356 = shalt.err (!%p1353_p6)
}
  0x23   : > { %s1357_s19 = scalar_lea.vmem %s259_s17, 1024  ;;  %p1365_p5 = scmp.lt.s32.totalorder %s259_s17, %s259_s17 }
  0x24   : > { %p1358_p7 = scmp.ne.s32.totalorder %s259_s17, %s1357_s19  ;;  %p1366_p8 = scmp.lt.s32.totalorder %s1357_s19, %s1357_s19 }
  0x26   : > { %p1360_p9 = pnand %p1358_p7, %p1346_p0  ;;  %p1367_p10 = por %p1366_p8, %p1365_p5 }
  0x28   : > { %p1361_p11 = pneg %p1360_p9 }
  0x2a   : > { %p1368_p3 = pnand %p1367_p10, %p1361_p11 }
  0x2c   : > { %1371 = shalt.err (!%p1368_p3)
}
  0x2d   : > { %s1544_s21 = smov 64   ;;  %s1545_s22 = smov 4  }
  0x2e   : > { %1239 = dma.hbm_to_vmem [thread:$0]  (!%p1673_p12), %s1885_s2, 1024, %s259_s17, [#allocation8], %s1544_s21, %s1544_s21, %s1545_s22  }
  0x2f   : > { %s1372_s16 = scalar_lea.hbm %s1886_s3, 1024 }
  0x30   : > { %p1373_p13 = scmp.ne.s32.totalorder %s1886_s3, %s1372_s16  ;;  %p1379_p8 = scmp.lt.u32.totalorder %s1372_s16, %s1886_s3 }
  0x32   : > { %p1375_p3 = pnand %p1373_p13, %p1346_p0 }
  0x34   : > { %p1376_p5 = pneg %p1375_p3 }
  0x36   : > { %p1381_p10 = pnand %p1379_p8, %p1376_p5 }
  0x38   : > { %1384 = shalt.err (!%p1381_p10)
}
  0x39   : > { %s1385_s17 = scalar_lea.vmem %s1677_s20, 1024  ;;  %p1393_p6 = scmp.lt.s32.totalorder %s1677_s20, %s1677_s20 }
  0x3a   : > { %p1386_p1 = scmp.ne.s32.totalorder %s1677_s20, %s1385_s17  ;;  %p1394_p7 = scmp.lt.s32.totalorder %s1385_s17, %s1385_s17 }
  0x3c   : > { %p1388_p2 = pnand %p1386_p1, %p1346_p0  ;;  %p1395_p9 = por %p1394_p7, %p1393_p6 }
  0x3e   : > { %p1389_p4 = pneg %p1388_p2 }
  0x40   : > { %p1396_p11 = pnand %p1395_p9, %p1389_p4 }
  0x42   : > { %1399 = shalt.err (!%p1396_p11)
}
  0x43   : > { %1242 = dma.hbm_to_vmem [thread:$0]  (!%p1673_p12), %s1886_s3, 1024, %s1677_s20, [#allocation8], %s1544_s21, %s1544_s21, %s1545_s22  }
  0x44   : > { %p1069_p13 = scmp.ge.s32.totalorder %s1540_s29, 3 }
  0x46   : > { %284 = sbr.rel (%p1069_p13) target bundleno = 92 (0x5c), region = 32 }
  0x4d   : > { %s288_s14 = sand.u32 1, %s1528_s26   ;;  %s1116_s23 = sshll.u32 %s1536_s28, 7 }
  0x4e   : > { %s1070_s24 = sshll.u32 %s288_s14, 4  ;;  %s301_s11 = scalar_lea.hbm %s1884_s1, %s1116_s23 }
  0x4f   : > { %p1905_p0 = scmp.ne.s32.totalorder %s1899_s10, 0  ;;  %s292_s21 = scalar_lea.vmem [#allocation4], %s1070_s24 }
  0x50   : > { %s314_s22 = sshll.u32 %s292_s21, 4  ;;  %s1546_s19 = smov 384   ;;  %s315_s22 = int_to_ptr.vmem [resolvable:$true] %s314_s22 }
  0x51   : > { %s1211_s20 = scalar_select %p1905_p0, [#allocation0], [#allocation16] }
  0x52   : > { %1212 = sst [smem:[#allocation15]] (%p1905_p0), %s1546_s19  ;;  %s1547_s17 = smov 128  }
  0x53   : > { %s306_s16 = sld [smem:[%s1211_s20]]   ;;  %s1548_s30 = smov 2  }
  0x54   : > { %1213 = sst [smem:[#allocation15 + $0x1]] (%p1905_p0), %s1547_s17  ;;  %s1549_s8 = smov 64  }
  0x55   : > { %1214 = sst [smem:[#allocation15 + $0x2]] (%p1905_p0), %s1548_s30  ;;  %s1550_s24 = smov 4  }
  0x56   : > { %1215 = sst [smem:[#allocation15 + $0x3]] (%p1905_p0), %s1549_s8  ;;  %s289_s9 = scalar_lea.sflag [#allocation5], %s288_s14 }
  0x57   : > { %1216 = sst [smem:[#allocation15 + $0x4]] (%p1905_p0), %s1549_s8  ;;  %s1551_s20 = smov [#allocation14]  }
  0x58   : > { %1217 = sst [smem:[#allocation15 + $0x5]] (%p1905_p0), %s1550_s24 }
  0x59   : > { %s1073_s23 = sshll.u32 %s306_s16, 26 }
  0x5a   : > { %s1074_s18 = sadd.s32 134217728, %s1073_s23 }
  0x5b   : > { %1218 = dma.general (%p1905_p0), %s301_s11, 256, %s315_s22, %s289_s9, %s1551_s20, [#allocation15], %s1074_s18, 0  }
  0x5c PF: > { %p1906_p12 = scmp.ne.s32.totalorder %s1903_s15, 0 }
  0x5d   : > { %s341_s21 = sand.u32 (!%p1906_p12), 1, %s1524_s25   ;;  %p1907_p3 = scmp.ne.s32.totalorder (!%p1906_p12), %s1901_s13, 0 }
  0x5e   : > { %339 = sbr.rel (%p1906_p12) target bundleno = 856 (0x358), region = 40  ;;  %s1751_s19 = sshll.u32 (!%p1906_p12), %s341_s21, 4 }
  0x5f   : > { %s342_s17 = scalar_lea.sflag (!%p1906_p12), [#allocation5], %s341_s21  ;;  %s345_s16 = scalar_lea.vmem (!%p1906_p12), [#allocation4], %s1751_s19 }
  0x65   : > { %1503 = dma.done.wait (%p1907_p3), %s342_s17, 256  }
  0x66   : > { %1505 = vsyncadd (%p1907_p3), %s342_s17, 4294967040  ;;  %p1908_p5 = scmp.ne.s32.totalorder %s1900_s12, 0 }
  0x68   : > { %1507 = dma.done.wait (%p1908_p5), [#allocation8], 2048  }
  0x69   : > { %1509 = vsyncadd (%p1908_p5), [#allocation8], 4294965248  ;;  %p1079_p8 = scmp.ne.s32.totalorder %s1532_s27, 0 }
  0x6a   : > { %v1324_v0 = vld [vmem:[%s1883_s0] sm:$0xff] (!%p1079_p8)   ;;  %v1552_v1 = vmov (!%p1079_p8), 0.0   ;;  %vm415_vm0 = vcmask (!%p1079_p8), 1046528   ;;  %vm416_vm1 = vcmask (!%p1079_p8), 1047552   ;;  %v1325_v2 = vld [vmem:[%s1883_s0 + $0x8] sm:$0xff] (!%p1079_p8)   ;;  %v1553_v3 = vmov (!%p1079_p8), 65535  }
  0x6b   : > { %399 = sbr.rel (%p1079_p8) target bundleno = 329 (0x149), region = 56  ;;  %400 = vst [vmem:[#allocation3] sm:$0x1] (!%p1079_p8), %v1552_v1  ;;  %401 = vst [vmem:[#allocation3 + $0x1] sm:$0x1] (!%p1079_p8), %v1552_v1  ;;  %1143 = vmatprep.subr.bf16.mxu0 (!%p1079_p8), %v1552_v1  ;;  %1149 = vmatprep.subr.bf16.mxu1 (!%p1079_p8), %v1552_v1  ;;  %v417_v4 = vsel (!%p1079_p8), %vm415_vm0, 4294967295, %v1553_v3 }
  0x6c   : > { %v418_v5 = vsel (!%p1079_p8), %vm416_vm1, %v417_v4, 0  ;;  %vm1554_vm2 = vmmov (!%p1079_p8), 0   ;;  %vm411_vm3 = vcmask (!%p1079_p8), 121856   ;;  %v1555_v8 = vmov (!%p1079_p8), 1065369472  }
  0x6d   : > { %1145 = vmatprep.mubr.msk.bf16.mxu0 (!%p1079_p8), %vm1554_vm2, %v1552_v1  ;;  %1151 = vmatprep.mubr.msk.bf16.mxu1 (!%p1079_p8), %vm1554_vm2, %v1552_v1  ;;  %v420_v6 = vand.u32 (!%p1079_p8), %v1324_v0, %v418_v5  ;;  %v468_v7 = vand.u32 (!%p1079_p8), %v1325_v2, %v418_v5 }
  0x6f   : > { %1144 = vmatpush3.bf16.msra.mxu0 (!%p1079_p8), %v420_v6  ;;  %1150 = vmatpush3.bf16.msra.mxu1 (!%p1079_p8), %v468_v7 }
  0x72   : > { %1146 = vmatmul.mubr.msk.bf16.vlgmr.msra.gmra.mrb[0].mxu0 %vm411_vm3, %v1555_v8  ;;  %1152 = vmatmul.mubr.msk.bf16.vlgmr.msra.gmra.mrb[0].mxu1 %vm411_vm3, %v1555_v8 }
 0x145   : > { %v456_v9 = vpop.f32.mrb[0].mxu0  ;;  %v504_v10 = vpop.f32.mrb[0].mxu1 }
 0x146   : > { %v510_v11 = vmul.f32 0.06666667, %v456_v9  ;;  %v511_v12 = vmul.f32 0.06666667, %v504_v10  ;;  %v1147_v13 = vpop.f32.mrb[1].mxu0  ;;  %v1153_v14 = vpop.f32.mrb[1].mxu1 }
 0x147   : > { %v459_v15 = vpop.f32.mrb[2].mxu0  ;;  %v507_v16 = vpop.f32.mrb[2].mxu1 }
 0x148   : > { %512 = vst [vmem:[#allocation2] sm:$0x1] %v510_v11  ;;  %513 = vst [vmem:[#allocation2 + $0x1] sm:$0x1] %v511_v12  ;;  %v1148_v17 = vpop.f32.mrb[3].mxu0  ;;  %v1154_v18 = vpop.f32.mrb[3].mxu1 }
 0x149 PF: > { %v1326_v19 = vld [vmem:[%s345_s16] sm:$0xff]   ;;  %v1556_v20 = vmov 0.0   ;;  %v1327_v21 = vld [vmem:[%s345_s16 + $0x8] sm:$0xff]   ;;  %vm1557_vm4 = vmmov 0   ;;  %vm526_vm5 = vcmask 130048   ;;  %p1088_p10 = scmp.ne.s32.totalorder %s1532_s27, 2 }
 0x14a   : > { %1155 = vmatprep.subr.bf16.mxu0 %v1556_v20  ;;  %1161 = vmatprep.subr.bf16.mxu1 %v1556_v20  ;;  %v1558_v22 = vmov 1065369472   ;;  %v518_v23 = vld [vmem:[#allocation3] sm:$0x1]  ;;  %v519_v24 = vld [vmem:[#allocation3 + $0x1] sm:$0x1]  ;;  %v636_v44 = vlaneseq (!%p1088_p10) }
 0x14b   : > { %1156 = vmatpush3.bf16.msra.mxu0 %v1326_v19  ;;  %1157 = vmatprep.mubr.msk.bf16.mxu0 %vm1557_vm4, %v1556_v20  ;;  %v1328_v35 = vld [vmem:[#allocation9] sm:$0xff] (!%p1088_p10)   ;;  %v1559_v36 = vmov (!%p1088_p10), 0.0   ;;  %v1330_v38 = vld [vmem:[#allocation9 + $0x8] sm:$0xff] (!%p1088_p10)   ;;  %vm1560_vm6 = vmmov (!%p1088_p10), 0   ;;  %v1332_v40 = vld [vmem:[#allocation9 + $0x10] sm:$0xff] (!%p1088_p10)   ;;  %vm709_vm7 = vcmask (!%p1088_p10), 1041409  }
 0x14c   : > { %1162 = vmatpush3.bf16.msra.mxu1 %v1327_v21  ;;  %1163 = vmatprep.mubr.msk.bf16.mxu1 %vm1557_vm4, %v1556_v20  ;;  %v1329_v37 = vld [vmem:[#allocation7] sm:$0xff] (!%p1088_p10)   ;;  %v1331_v39 = vld [vmem:[#allocation7 + $0x8] sm:$0xff] (!%p1088_p10)   ;;  %v1333_v41 = vld [vmem:[#allocation7 + $0x10] sm:$0xff] (!%p1088_p10)   ;;  %v637_v47 = vshrl.u32 (!%p1088_p10), %v636_v44, 7  ;;  %v1561_v52 = vmov (!%p1088_p10), 1966171168  }
 0x14d   : > { %1167 = vmatprep.subr.bf16.mxu0 (!%p1088_p10), %v1559_v36  ;;  %1187 = vmatprep.subr.bf16.mxu1 (!%p1088_p10), %v1559_v36  ;;  %v1334_v42 = vld [vmem:[#allocation9 + $0x18] sm:$0xff] (!%p1088_p10)   ;;  %v1336_v45 = vld [vmem:[#allocation9 + $0x20] sm:$0xff] (!%p1088_p10)   ;;  %v634_v53 = vunpack.c.l.s4 (!%p1088_p10), %v1561_v52  ;;  %v1338_v55 = vld [vmem:[#allocation9 + $0x28] sm:$0xff] (!%p1088_p10)  }
 0x14e   : > { %1158 = vmatmul.mubr.msk.bf16.vlgmr.msra.gmra.mrb[0].mxu0 %vm526_vm5, %v1558_v22  ;;  %v1335_v43 = vld [vmem:[#allocation7 + $0x18] sm:$0xff] (!%p1088_p10)   ;;  %v1337_v46 = vld [vmem:[#allocation7 + $0x20] sm:$0xff] (!%p1088_p10)   ;;  %v1339_v58 = vld [vmem:[#allocation7 + $0x28] sm:$0xff] (!%p1088_p10)  }
 0x14f   : > { %1164 = vmatmul.mubr.msk.bf16.vlgmr.msra.gmra.mrb[0].mxu1 %vm526_vm5, %v1558_v22  ;;  %1168 = vmatpush3.bf16.msra.mxu0 (!%p1088_p10), %v1328_v35  ;;  %v624_v54 = vld [vmem:[#allocation2] sm:$0x1] (!%p1088_p10)  ;;  %v625_v56 = vld [vmem:[#allocation2 + $0x1] sm:$0x1] (!%p1088_p10)  ;;  %v635_v59 = vunpack.c.0.s8 (!%p1088_p10), %v634_v53  ;;  %v1340_v3 = vld [vmem:[#allocation9 + $0x30] sm:$0xff] (!%p1088_p10)  }
 0x150   : > { %1183 = vmatprep.mubr.msk.bf16.mxu0 (!%p1088_p10), %vm1560_vm6, %v1559_v36  ;;  %1188 = vmatpush3.bf16.msra.mxu1 (!%p1088_p10), %v1329_v37  ;;  %v668_v57 = vpack.c.bf16 (!%p1088_p10), %v624_v54, %v624_v54  ;;  %v632_v63 = vcombine.low (!%p1088_p10), %v624_v54, %v625_v56  ;;  %v669_v0 = vpack.c.bf16 (!%p1088_p10), %v625_v56, %v625_v56  ;;  %v1341_v6 = vld [vmem:[#allocation7 + $0x30] sm:$0xff] (!%p1088_p10)   ;;  %v1342_v12 = vld [vmem:[#allocation9 + $0x38] sm:$0xff] (!%p1088_p10)  }
 0x151   : > { %1169 = vmatprep.subr.bf16.mxu0 (!%p1088_p10), %v1559_v36  ;;  %1189 = vmatprep.subr.bf16.mxu1 (!%p1088_p10), %v1559_v36  ;;  %v638_v1 = vsub.s32 (!%p1088_p10), %v635_v59, %v637_v47  ;;  %v1343_v14 = vld [vmem:[#allocation7 + $0x38] sm:$0xff] (!%p1088_p10)  }
 0x152   : > { %1203 = vmatprep.mubr.msk.bf16.mxu1 (!%p1088_p10), %vm1560_vm6, %v1559_v36  ;;  %v804_v5 = vunpack.c.l.b16 (!%p1088_p10), %v669_v0  ;;  %v803_v10 = vunpack.c.l.b16 (!%p1088_p10), %v668_v57  ;;  %v1107_v20 = vld [vmem:[%s1887_s4] ss:$0 sm:$0xff] (!%p1088_p10) }
 0x153   : > { %1170 = vmatpush3.bf16.msra.mxu0 (!%p1088_p10), %v1330_v38  ;;  %v639_v9 = vrot.slane (!%p1088_p10), %v632_v63, %v638_v1 }
 0x154   : > { %1190 = vmatpush3.bf16.msra.mxu1 (!%p1088_p10), %v1331_v39  ;;  %1171 = vmatprep.subr.bf16.mxu0 (!%p1088_p10), %v1559_v36  ;;  %v805_v11 = vrot.slane (!%p1088_p10), %v804_v5, 7 }
 0x155   : > { %1191 = vmatprep.subr.bf16.mxu1 (!%p1088_p10), %v1559_v36  ;;  %1089 = vst.sshfl [vmem:[#allocation10] sm:$0x5 pattern:$0x73625140] (!%p1088_p10), %v639_v9 }
 0x156   : > { %v806_v15 = vsel (!%p1088_p10), %vm709_vm7, %v805_v11, %v803_v10 }
 0x157   : > { %1172 = vmatpush3.bf16.msra.mxu0 (!%p1088_p10), %v1332_v40  ;;  %v807_v17 = vpack.c.b16 (!%p1088_p10), %v806_v15, %v806_v15 }
 0x158   : > { %1192 = vmatpush3.bf16.msra.mxu1 (!%p1088_p10), %v1333_v41  ;;  %1173 = vmatprep.subr.bf16.mxu0 (!%p1088_p10), %v1559_v36 }
 0x159   : > { %1193 = vmatprep.subr.bf16.mxu1 (!%p1088_p10), %v1559_v36 }
 0x15b   : > { %1174 = vmatpush3.bf16.msra.mxu0 (!%p1088_p10), %v1334_v42 }
 0x15c   : > { %1194 = vmatpush3.bf16.msra.mxu1 (!%p1088_p10), %v1335_v43  ;;  %1175 = vmatprep.subr.bf16.mxu0 (!%p1088_p10), %v1559_v36 }
 0x15d   : > { %1195 = vmatprep.subr.bf16.mxu1 (!%p1088_p10), %v1559_v36 }
 0x15f   : > { %1176 = vmatpush3.bf16.msra.mxu0 (!%p1088_p10), %v1336_v45 }
 0x160   : > { %1196 = vmatpush3.bf16.msra.mxu1 (!%p1088_p10), %v1337_v46  ;;  %1177 = vmatprep.subr.bf16.mxu0 (!%p1088_p10), %v1559_v36 }
 0x161   : > { %1197 = vmatprep.subr.bf16.mxu1 (!%p1088_p10), %v1559_v36 }
 0x163   : > { %1178 = vmatpush3.bf16.msra.mxu0 (!%p1088_p10), %v1338_v55 }
 0x164   : > { %1198 = vmatpush3.bf16.msra.mxu1 (!%p1088_p10), %v1339_v58  ;;  %1179 = vmatprep.subr.bf16.mxu0 (!%p1088_p10), %v1559_v36 }
 0x165   : > { %1199 = vmatprep.subr.bf16.mxu1 (!%p1088_p10), %v1559_v36 }
 0x167   : > { %1180 = vmatpush3.bf16.msra.mxu0 (!%p1088_p10), %v1340_v3 }
 0x168   : > { %1200 = vmatpush3.bf16.msra.mxu1 (!%p1088_p10), %v1341_v6  ;;  %1181 = vmatprep.subr.bf16.mxu0 (!%p1088_p10), %v1559_v36 }
 0x169   : > { %1201 = vmatprep.subr.bf16.mxu1 (!%p1088_p10), %v1559_v36 }
 0x16b   : > { %1182 = vmatpush3.bf16.msra.mxu0 (!%p1088_p10), %v1342_v12 }
 0x16c   : > { %1202 = vmatpush3.bf16.msra.mxu1 (!%p1088_p10), %v1343_v14 }
 0x21f   : > { %623 = sbr.rel (%p1088_p10) target bundleno = 785 (0x311), region = 60 }
 0x221   : > { %v564_v25 = vpop.f32.mrb[0].mxu0 }
 0x222   : > { %v616_v26 = vadd.f32 %v564_v25, %v518_v23  ;;  %v610_v27 = vpop.f32.mrb[0].mxu1  ;;  %v1159_v28 = vpop.f32.mrb[1].mxu0 }
 0x223   : > { %v617_v29 = vadd.f32 %v610_v27, %v519_v24  ;;  %v1165_v30 = vpop.f32.mrb[1].mxu1  ;;  %v567_v31 = vpop.f32.mrb[2].mxu0 }
 0x224   : > { %618 = vst [vmem:[#allocation3] sm:$0x1] %v616_v26  ;;  %v613_v32 = vpop.f32.mrb[2].mxu1  ;;  %v1160_v33 = vpop.f32.mrb[3].mxu0 }
 0x225   : > { %619 = vst [vmem:[#allocation3 + $0x1] sm:$0x1] %v617_v29  ;;  %v1166_v34 = vpop.f32.mrb[3].mxu1  ;;  %1204 = vmatmul.mubr.bf16.vlgmr.msra.gmra.mrb[0].mxu1 (!%p1088_p10), %v807_v17 }
 0x22b   : > { %v626_v48 = vld [vmem:[#allocation3] sm:$0x1] }
 0x22c   : > { %v627_v49 = vld [vmem:[#allocation3 + $0x1] sm:$0x1]  ;;  %v628_v50 = vmul.f32 0.022222223, %v626_v48 }
 0x22d   : > { %v629_v51 = vmul.f32 0.022222223, %v627_v49 }
 0x22e   : > { %v686_v61 = vpack.c.bf16 %v628_v50, %v628_v50 }
 0x22f   : > { %v651_v60 = vcombine.low %v628_v50, %v629_v51  ;;  %v687_v62 = vpack.c.bf16 %v629_v51, %v629_v51 }
 0x230   : > { %v706_v4 = vunpack.c.l.b16 %v686_v61 }
 0x231   : > { %v707_v2 = vunpack.c.l.b16 %v687_v62  ;;  %v658_v7 = vrot.slane %v651_v60, %v638_v1 }
 0x233   : > { %v708_v8 = vrot.slane %v707_v2, 7  ;;  %1090 = vst.sshfl [vmem:[#allocation11] sm:$0x5 pattern:$0x73625140] %v658_v7 }
 0x235   : > { %v710_v13 = vsel %vm709_vm7, %v708_v8, %v706_v4 }
 0x236   : > { %v711_v16 = vpack.c.b16 %v710_v13, %v710_v13 }
 0x238   : > { %1184 = vmatmul.mubr.bf16.vlgmr.msra.gmra.mrb[0].mxu0 %v711_v16 }
 0x2f8   : > { %v891_v19 = vpop.f32.mrb[0].mxu1 }
 0x2f9   : > { %v1205_v23 = vpop.f32.mrb[1].mxu1 }
 0x2fa   : > { %v894_v25 = vpop.f32.mrb[2].mxu1 }
 0x2fb   : > { %v1206_v28 = vpop.f32.mrb[3].mxu1 }
 0x30b   : > { %v795_v18 = vpop.f32.mrb[0].mxu0 }
 0x30c   : > { %v1185_v21 = vpop.f32.mrb[1].mxu0  ;;  %v892_v22 = vadd.f32 %v891_v19, %v795_v18 }
 0x30d   : > { %v798_v24 = vpop.f32.mrb[2].mxu0 }
 0x30e   : > { %v1186_v26 = vpop.f32.mrb[3].mxu0  ;;  %v904_v27 = vadd.f32 %v1107_v20, %v892_v22 }
 0x310   : > { %905 = vst [vmem:[#allocation13] sm:$0x3] %v904_v27 }
 0x311 PF: > { %s1909_s11 = sadd.s32 4294967295, %s1540_s29   ;;  %s1562_s30 = smov [#allocation11]  }
 0x312   : > { %p1799_p1 = scmp.eq.s32.totalorder %s1909_s11, 2  ;;  %s928_s8 = sshll.u32 %s1562_s30, 4  ;;  %s929_s8 = int_to_ptr.vmem [resolvable:$true] %s928_s8 }
 0x313   : > { %s1400_s23 = scalar_lea.vmem %s929_s8, 32  ;;  %p1407_p7 = scmp.lt.s32.totalorder %s929_s8, %s929_s8 }
 0x314   : > { %p1401_p2 = scmp.ne.s32.totalorder %s929_s8, %s1400_s23  ;;  %p1408_p9 = scmp.lt.s32.totalorder %s1400_s23, %s1400_s23 }
 0x316   : > { %p1402_p4 = pnand %p1401_p2, %p1799_p1  ;;  %p1409_p11 = por %p1408_p9, %p1407_p7 }
 0x318   : > { %p1403_p6 = pneg %p1402_p4 }
 0x31a   : > { %p1410_p13 = pnand %p1409_p11, %p1403_p6 }
 0x31c   : > { %1413 = shalt.err (!%p1410_p13)
}
 0x31d   : > { %s1414_s9 = scalar_lea.hbm %s1889_s6, 32 }
 0x31e   : > { %p1415_p0 = scmp.ne.s32.totalorder %s1889_s6, %s1414_s9  ;;  %p1420_p5 = scmp.lt.u32.totalorder %s1414_s9, %s1889_s6 }
 0x320   : > { %p1416_p12 = pnand %p1415_p0, %p1799_p1 }
 0x322   : > { %p1417_p3 = pneg %p1416_p12 }
 0x324   : > { %p1422_p8 = pnand %p1420_p5, %p1417_p3 }
 0x326   : > { %1425 = shalt.err (!%p1422_p8)
}
 0x327   : > { %1227 = dma.vmem_to_hbm [thread:$0]  (%p1799_p1), %s929_s8, 32, %s1889_s6, [#allocation12]  }
 0x328   : > { %s1563_s15 = smov [#allocation10]   ;;  %s1564_s14 = smov [#allocation13]  }
 0x329   : > { %s915_s13 = sshll.u32 %s1563_s15, 4  ;;  %s941_s27 = sshll.u32 %s1564_s14, 4  ;;  %s916_s13 = int_to_ptr.vmem [resolvable:$true] %s915_s13  ;;  %s942_s27 = int_to_ptr.vmem [resolvable:$true] %s941_s27 }
 0x32a   : > { %s1426_s12 = scalar_lea.vmem %s916_s13, 32  ;;  %p1433_p6 = scmp.lt.s32.totalorder %s916_s13, %s916_s13 }
 0x32b   : > { %p1427_p10 = scmp.ne.s32.totalorder %s916_s13, %s1426_s12  ;;  %p1434_p7 = scmp.lt.s32.totalorder %s1426_s12, %s1426_s12 }
 0x32d   : > { %p1428_p2 = pnand %p1427_p10, %p1799_p1  ;;  %p1435_p9 = por %p1434_p7, %p1433_p6 }
 0x32f   : > { %p1429_p4 = pneg %p1428_p2 }
 0x331   : > { %p1436_p11 = pnand %p1435_p9, %p1429_p4 }
 0x333   : > { %1439 = shalt.err (!%p1436_p11)
}
 0x334   : > { %s1440_s8 = scalar_lea.hbm %s1888_s5, 32 }
 0x335   : > { %p1441_p13 = scmp.ne.s32.totalorder %s1888_s5, %s1440_s8  ;;  %p1446_p3 = scmp.lt.u32.totalorder %s1440_s8, %s1888_s5 }
 0x337   : > { %p1442_p0 = pnand %p1441_p13, %p1799_p1 }
 0x339   : > { %p1443_p12 = pneg %p1442_p0 }
 0x33b   : > { %p1448_p5 = pnand %p1446_p3, %p1443_p12 }
 0x33d   : > { %1451 = shalt.err (!%p1448_p5)
}
 0x33e   : > { %1225 = dma.vmem_to_hbm [thread:$0]  (%p1799_p1), %s916_s13, 32, %s1888_s5, [#allocation6]  }
 0x33f   : > { %s1452_s19 = scalar_lea.vmem %s942_s27, 32  ;;  %p1459_p4 = scmp.lt.s32.totalorder %s942_s27, %s942_s27 }
 0x340   : > { %p1453_p8 = scmp.ne.s32.totalorder %s942_s27, %s1452_s19  ;;  %p1460_p6 = scmp.lt.s32.totalorder %s1452_s19, %s1452_s19 }
 0x342   : > { %p1454_p10 = pnand %p1453_p8, %p1799_p1  ;;  %p1461_p7 = por %p1460_p6, %p1459_p4 }
 0x344   : > { %p1455_p2 = pneg %p1454_p10 }
 0x346   : > { %p1462_p9 = pnand %p1461_p7, %p1455_p2 }
 0x348   : > { %1465 = shalt.err (!%p1462_p9)
}
 0x349   : > { %s1466_s10 = scalar_lea.hbm %s1890_s7, 32 }
 0x34a   : > { %p1467_p11 = scmp.ne.s32.totalorder %s1890_s7, %s1466_s10  ;;  %p1472_p12 = scmp.lt.u32.totalorder %s1466_s10, %s1890_s7 }
 0x34c   : > { %p1468_p13 = pnand %p1467_p11, %p1799_p1 }
 0x34e   : > { %p1469_p0 = pneg %p1468_p13 }
 0x350   : > { %p1474_p3 = pnand %p1472_p12, %p1469_p0 }
 0x352   : > { %1477 = shalt.err (!%p1474_p3)
}
 0x353   : > { %1229 = dma.vmem_to_hbm [thread:$0]  (%p1799_p1), %s942_s27, 32, %s1890_s7, [#allocation12]  }
 0x354   : > { %1511 = dma.done.wait (%p1799_p1), [#allocation6], 32  }
 0x355   : > { %1513 = vsyncadd (%p1799_p1), [#allocation6], 4294967264 }
 0x356   : > { %1515 = dma.done.wait (%p1799_p1), [#allocation12], 64  }
 0x357   : > { %1517 = vsyncadd (%p1799_p1), [#allocation12], 4294967232 }
 0x358 PF: > { %s24_s29 = sadd.s32 1, %s1540_s29   ;;  %s1911_s8 = sld [smem:[#allocation22_spill]] }
 0x359   : > { %p21_p5 = scmp.ge.s32.totalorder %s24_s29, 5   ;;  %s1912_s23 = sld [smem:[#allocation21_spill]] }
 0x35a   : > { %s1913_s24 = smov %s1524_s25  ;;  %s1914_s25 = smov %s1528_s26 }
 0x35b   : > { %s1916_s27 = smov %s1536_s28  ;;  %23 = sbr.rel (!%p21_p5) target bundleno = 7 (0x7), region = 120 }
 0x35e   : > { %s1915_s26 = smov %s1911_s8 }
 0x35f   : > { %s1917_s28 = smov %s1912_s23 }
 0x362   :  { %962 = vsyncpa [#allocation5], 1 }
 0x363   :  { %964 = vsyncpa [#allocation5 + $0x1], 1 }
 0x364   :  { %965 = vsyncpa [#allocation8], 1 }
 0x365   :  { %966 = vsyncpa [#allocation6], 1 }
 0x366   :  { %968 = vsyncpa [#allocation6 + $0x1], 1 }
 0x367   :  { %969 = vsyncpa [#allocation12], 1 }

</bundles_post_ra>
